<compile_context>
chip_gen: v7x
topology: tpu7x:2x2x1
jax: 0.10.0
libtpu: 0.0.40
codegen_flags: <defaults>
</compile_context>

<pallas_src>
import jax
import jax.numpy as jnp
from jax.experimental import pallas as pl
from jax.experimental.pallas import tpu as pltpu


def _linear_kernel(w_ref, b_ref, x_ref, o_ref):
    # w_ref: (tco, C_in)  weight rows for this C_out tile (resident if 1 tile)
    # b_ref: (tco, 1)     bias rows, broadcast over lanes
    # x_ref: (C_in, tl)   one batch, one spatial tile (lane axis = spatial)
    # o_ref: (tco, tl)    lane-dense output tile -> unmasked stores
    acc = jnp.dot(w_ref[...], x_ref[...], preferred_element_type=jnp.float32)
    o_ref[...] = (acc + b_ref[...]).astype(o_ref.dtype)


def _physical_vmem_bytes():
    try:
        return int(pltpu.get_tpu_info().vmem_capacity_bytes)
    except Exception:
        return 64 << 20  # conservative (v7x per-TC); safe on every generation


def _choose_cout_tile(c_out):
    """Tile C_out only when it is large; keep tiles multiple-of-8 sublanes."""
    if c_out <= 512:
        return c_out
    for cand in (512, 384, 256, 128, 64):
        if c_out % cand == 0:
            return cand
    return 512  # ragged last C_out tile; padded rows are masked on store


def _choose_spatial_tile(hw, c_in, tco, itemsize, budget_bytes, fixed_bytes):
    """Largest lane tile that fits the VMEM budget, preferring divisors of HW."""
    denom = 2 * (c_in + tco) * itemsize          # double-buffered x + out / lane
    tl_max = max((budget_bytes - fixed_bytes) // denom, 128)
    tl_max = min(tl_max, 8192)
    if hw <= tl_max:
        return hw                                # full extent: one tile, no mask
    tl_max = max((tl_max // 128) * 128, 128)
    if hw % 128 == 0:
        # Largest multiple of 128 that divides HW -> no ragged last tile.
        for cand in range(tl_max, 127, -128):
            if hw % cand == 0:
                return cand
    return tl_max                                # ragged last tile (masked store)


def linear_pallas(x_nchw, weight, bias=None):
    """1x1 Conv2d forward (== per-pixel linear), native NCHW layout.

    x_nchw : (N, C_in, H, W)
    weight : (C_out, C_in, 1, 1)   (PyTorch Conv2d layout)
    bias   : (C_out,) or None
    returns: (N, C_out, H, W)
    """
    N, C_in, H, W = x_nchw.shape
    C_out = weight.shape[0]
    HW = H * W

    if bias is None:
        bias = jnp.zeros((C_out,), dtype=x_nchw.dtype)

    # Reshapes only -- no transposes, no extra HBM passes.
    x_rows = x_nchw.reshape(N, C_in, HW)          # (N, C_in, H*W)
    w2d = weight.reshape(C_out, C_in)             # (C_out, C_in)
    b2d = bias.reshape(C_out, 1)                  # (C_out, 1), broadcast on lanes

    itemsize = jnp.dtype(x_nchw.dtype).itemsize
    w_itemsize = jnp.dtype(weight.dtype).itemsize

    physical = _physical_vmem_bytes()
    # Scoped budget with headroom for compiler-internal scratch:
    #   v7x (64 MiB)  -> ~35 MiB;  v5e/v6e (128 MiB) -> ~70 MiB.
    budget = min(int(physical * 0.55), 96 << 20)

    tco = _choose_cout_tile(C_out)
    n_co = pl.cdiv(C_out, tco)
    params_resident = n_co == 1                   # weight/bias grid-invariant?

    # Honest fixed footprint: weight tile(s) + bias tile lane-padded to 128.
    param_bufs = 1 if params_resident else 2
    fixed_bytes = param_bufs * (tco * C_in + tco * 128) * w_itemsize

    tl = _choose_spatial_tile(HW, C_in, tco, itemsize, budget, fixed_bytes)
    n_sp = pl.cdiv(HW, tl)
    grid = (N, n_co, n_sp)

    est_vmem = fixed_bytes + 2 * (C_in + tco) * tl * itemsize
    vmem_limit = int(max(min(int(est_vmem * 1.5), budget), est_vmem, 16 << 20))
    vmem_limit = min(vmem_limit, int(physical * 0.9))

    cost = pl.CostEstimate(
        flops=2 * N * HW * C_in * C_out,
        transcendentals=0,
        bytes_accessed=(N * (C_in + C_out) * HW) * itemsize
        + (C_out * C_in + C_out) * w_itemsize,
    )

    def build(param_pipeline_mode):
        pkw = {} if param_pipeline_mode is None else {
            "pipeline_mode": param_pipeline_mode}
        return pl.pallas_call(
            _linear_kernel,
            out_shape=jax.ShapeDtypeStruct((N, C_out, HW), x_nchw.dtype),
            grid_spec=pltpu.PrefetchScalarGridSpec(
                num_scalar_prefetch=0,
                grid=grid,
                in_specs=[
                    # weight rows for this C_out tile (resident when n_co==1)
                    pl.BlockSpec((tco, C_in), lambda n, co, j: (co, 0), **pkw),
                    # bias rows
                    pl.BlockSpec((tco, 1), lambda n, co, j: (co, 0), **pkw),
                    # x: one batch, full C_in, one spatial tile
                    pl.BlockSpec((pl.Squeezed(), C_in, tl),
                                 lambda n, co, j: (n, 0, j)),
                ],
                out_specs=pl.BlockSpec((pl.Squeezed(), tco, tl),
                                       lambda n, co, j: (n, co, j)),
            ),
            compiler_params=pltpu.CompilerParams(
                dimension_semantics=("parallel", "parallel", "parallel"),
                vmem_limit_bytes=vmem_limit,
            ),
            cost_estimate=cost,
        )

    # Prefer single-buffered grid-invariant params; fall back to the default
    # (double-buffered) pipeline if this JAX build rejects Buffered(1).
    out = None
    err = None
    modes = [pl.Buffered(1), None] if params_resident else [None]
    for mode in modes:
        try:
            out = build(mode)(w2d, b2d, x_rows)
            break
        except Exception as e:  # noqa: BLE001 - retry with the safe default
            err = e
    if out is None:
        raise err

    # (N, C_out, H*W) -> (N, C_out, H, W): reshape only, matches PyTorch NCHW.
    return out.reshape(N, C_out, H, W)


if __name__ == "__main__":
    key = jax.random.PRNGKey(0)
    k_x, k_w, k_b = jax.random.split(key, 3)

    N, C_in, C_out, Hs, Ws = 2, 4, 8, 16, 16

    x = jax.random.normal(k_x, (N, C_in, Hs, Ws), dtype=jnp.float32)
    # Deterministic parameter init (stand-in for Conv2d's kaiming-uniform init).
    bound = 1.0 / (C_in ** 0.5)
    weight = jax.random.uniform(k_w, (C_out, C_in, 1, 1),
                                minval=-bound, maxval=bound, dtype=jnp.float32)
    bias = jax.random.uniform(k_b, (C_out,),
                              minval=-bound, maxval=bound, dtype=jnp.float32)

    out = linear_pallas(x, weight, bias)
    out = jax.block_until_ready(out)

    # Reference check in plain JAX (same math as Conv2d 1x1).
    ref = jnp.einsum("nchw,oc->nohw", x, weight.reshape(C_out, C_in)) \
        + bias.reshape(1, C_out, 1, 1)
    assert out.shape == (N, C_out, Hs, Ws)
    assert jnp.allclose(out, ref, atol=1e-5, rtol=1e-5)

    print("KERNEL_OK")
</pallas_src>

<mosaic_0001>
module attributes {stable_mosaic.version = 11 : i64} {
  func.func @_linear_kernel(%arg0: i32, %arg1: i32, %arg2: i32, %arg3: memref<8x4xf32, #tpu.memory_space<vmem>>, %arg4: memref<8x1xf32, #tpu.memory_space<vmem>>, %arg5: memref<1x4x256xf32, #tpu.memory_space<vmem>>, %arg6: memref<1x8x256xf32, #tpu.memory_space<vmem>>) attributes {dimension_semantics = [#tpu.dimension_semantics<parallel>, #tpu.dimension_semantics<parallel>, #tpu.dimension_semantics<parallel>], iteration_bounds = array<i64: 2, 1, 1>, scalar_prefetch = 0 : i64, scratch_operands = 0 : i64, tpu.core_type = #tpu.core_type<tc>, window_params = [{pipeline_mode = #tpu.pipeline_mode<synchronous>, transform_indices = @transform_0, window_bounds = array<i64: 8, 4>}, {pipeline_mode = #tpu.pipeline_mode<synchronous>, transform_indices = @transform_1, window_bounds = array<i64: 8, 1>}, {transform_indices = @transform_2, window_bounds = array<i64: 1, 4, 256>}, {transform_indices = @transform_3, window_bounds = array<i64: 1, 8, 256>}]} {
    %c0 = arith.constant 0 : index
    %c0_0 = arith.constant 0 : index
    %0 = vector.load %arg3[%c0, %c0_0] : memref<8x4xf32, #tpu.memory_space<vmem>>, vector<8x4xf32>
    %c0_1 = arith.constant 0 : index
    %c0_2 = arith.constant 0 : index
    %c0_3 = arith.constant 0 : index
    %1 = vector.load %arg5[%c0_1, %c0_2, %c0_3] : memref<1x4x256xf32, #tpu.memory_space<vmem>>, vector<1x4x256xf32>
    %2 = vector.shape_cast %1 : vector<1x4x256xf32> to vector<4x256xf32>
    %cst = arith.constant dense<0.000000e+00> : vector<8x256xf32>
    %3 = tpu.matmul %0, %2, %cst {dimension_numbers = #tpu.dot_dimension_numbers<[1], [0], [0], [1], [0, 0, 1, 1], [], []>} : vector<8x4xf32>, vector<4x256xf32>, vector<8x256xf32> -> vector<8x256xf32>
    %c0_4 = arith.constant 0 : index
    %c0_5 = arith.constant 0 : index
    %4 = vector.load %arg4[%c0_4, %c0_5] : memref<8x1xf32, #tpu.memory_space<vmem>>, vector<8x1xf32>
    %5 = vector.broadcast %4 : vector<8x1xf32> to vector<8x256xf32>
    %6 = arith.addf %3, %5 : vector<8x256xf32>
    %c0_6 = arith.constant 0 : index
    %c0_7 = arith.constant 0 : index
    %c0_8 = arith.constant 0 : index
    %7 = vector.load %arg6[%c0_6, %c0_7, %c0_8] : memref<1x8x256xf32, #tpu.memory_space<vmem>>, vector<1x8x256xf32>
    %8 = vector.shape_cast %7 : vector<1x8x256xf32> to vector<8x256xf32>
    %9 = vector.shape_cast %6 : vector<8x256xf32> to vector<1x8x256xf32>
    tpu.vector_store %arg6[%c0_6, %c0_7, %c0_8], %9 {strides = array<i32>} : memref<1x8x256xf32, #tpu.memory_space<vmem>>, vector<1x8x256xf32>,
    return
  }
  func.func @transform_0(%arg0: i32, %arg1: i32, %arg2: i32) -> (i32, i32) {
    %c0_i32 = arith.constant 0 : i32
    %c0_i32_0 = arith.constant 0 : i32
    return %arg1, %c0_i32 : i32, i32
  }
  func.func @transform_1(%arg0: i32, %arg1: i32, %arg2: i32) -> (i32, i32) {
    %c0_i32 = arith.constant 0 : i32
    %c0_i32_0 = arith.constant 0 : i32
    return %arg1, %c0_i32 : i32, i32
  }
  func.func @transform_2(%arg0: i32, %arg1: i32, %arg2: i32) -> (i32, i32, i32) {
    %c0_i32 = arith.constant 0 : i32
    %c0_i32_0 = arith.constant 0 : i32
    return %arg0, %c0_i32, %arg2 : i32, i32, i32
  }
  func.func @transform_3(%arg0: i32, %arg1: i32, %arg2: i32) -> (i32, i32, i32) {
    %c0_i32 = arith.constant 0 : i32
    return %arg0, %arg1, %arg2 : i32, i32, i32
  }
}

module attributes {stable_mosaic.version = 11 : i64} {
  func.func @_linear_kernel(%arg0: i32, %arg1: i32, %arg2: i32, %arg3: memref<8x4xf32, #tpu.memory_space<vmem>>, %arg4: memref<8x1xf32, #tpu.memory_space<vmem>>, %arg5: memref<1x4x256xf32, #tpu.memory_space<vmem>>, %arg6: memref<1x8x256xf32, #tpu.memory_space<vmem>>) attributes {dimension_semantics = [#tpu.dimension_semantics<parallel>, #tpu.dimension_semantics<parallel>, #tpu.dimension_semantics<parallel>], iteration_bounds = array<i64: 2, 1, 1>, scalar_prefetch = 0 : i64, scratch_operands = 0 : i64, tpu.core_type = #tpu.core_type<tc>, window_params = [{transform_indices = @transform_0, window_bounds = array<i64: 8, 4>}, {transform_indices = @transform_1, window_bounds = array<i64: 8, 1>}, {transform_indices = @transform_2, window_bounds = array<i64: 1, 4, 256>}, {transform_indices = @transform_3, window_bounds = array<i64: 1, 8, 256>}]} {
    %c0 = arith.constant 0 : index
    %c0_0 = arith.constant 0 : index
    %0 = vector.load %arg3[%c0, %c0_0] : memref<8x4xf32, #tpu.memory_space<vmem>>, vector<8x4xf32>
    %c0_1 = arith.constant 0 : index
    %c0_2 = arith.constant 0 : index
    %c0_3 = arith.constant 0 : index
    %1 = vector.load %arg5[%c0_1, %c0_2, %c0_3] : memref<1x4x256xf32, #tpu.memory_space<vmem>>, vector<1x4x256xf32>
    %2 = vector.shape_cast %1 : vector<1x4x256xf32> to vector<4x256xf32>
    %cst = arith.constant dense<0.000000e+00> : vector<8x256xf32>
    %3 = tpu.matmul %0, %2, %cst {dimension_numbers = #tpu.dot_dimension_numbers<[1], [0], [0], [1], [0, 0, 1, 1], [], []>} : vector<8x4xf32>, vector<4x256xf32>, vector<8x256xf32> -> vector<8x256xf32>
    %c0_4 = arith.constant 0 : index
    %c0_5 = arith.constant 0 : index
    %4 = vector.load %arg4[%c0_4, %c0_5] : memref<8x1xf32, #tpu.memory_space<vmem>>, vector<8x1xf32>
    %5 = vector.broadcast %4 : vector<8x1xf32> to vector<8x256xf32>
    %6 = arith.addf %3, %5 : vector<8x256xf32>
    %c0_6 = arith.constant 0 : index
    %c0_7 = arith.constant 0 : index
    %c0_8 = arith.constant 0 : index
    %7 = vector.load %arg6[%c0_6, %c0_7, %c0_8] : memref<1x8x256xf32, #tpu.memory_space<vmem>>, vector<1x8x256xf32>
    %8 = vector.shape_cast %7 : vector<1x8x256xf32> to vector<8x256xf32>
    %9 = vector.shape_cast %6 : vector<8x256xf32> to vector<1x8x256xf32>
    tpu.vector_store %arg6[%c0_6, %c0_7, %c0_8], %9 {strides = array<i32>} : memref<1x8x256xf32, #tpu.memory_space<vmem>>, vector<1x8x256xf32>,
    return
  }
  func.func @transform_0(%arg0: i32, %arg1: i32, %arg2: i32) -> (i32, i32) {
    %c0_i32 = arith.constant 0 : i32
    %c0_i32_0 = arith.constant 0 : i32
    return %arg1, %c0_i32 : i32, i32
  }
  func.func @transform_1(%arg0: i32, %arg1: i32, %arg2: i32) -> (i32, i32) {
    %c0_i32 = arith.constant 0 : i32
    %c0_i32_0 = arith.constant 0 : i32
    return %arg1, %c0_i32 : i32, i32
  }
  func.func @transform_2(%arg0: i32, %arg1: i32, %arg2: i32) -> (i32, i32, i32) {
    %c0_i32 = arith.constant 0 : i32
    %c0_i32_0 = arith.constant 0 : i32
    return %arg0, %c0_i32, %arg2 : i32, i32, i32
  }
  func.func @transform_3(%arg0: i32, %arg1: i32, %arg2: i32) -> (i32, i32, i32) {
    %c0_i32 = arith.constant 0 : i32
    return %arg0, %arg1, %arg2 : i32, i32, i32
  }
}

</mosaic_0001>

<bundles_post_ra>
// kernel: tpu_custom_call.1
= control target key start
LH: loop header
LB: loop body
LE: loop exit
PB: predicated region body
PF: predicated region fallthrough
CT: control target
= control target key end

     0   :  { %8 = vsyncpa [#allocation3], 0  ;;  %s765_s0 = inlined_call_operand.vmem [shape: f32[8,4], index: 0, kind: input, shape index: {}]   ;;  %s766_s1 = inlined_call_operand.vmem [shape: f32[8,1], index: 1, kind: input, shape index: {}]   ;;  %s767_s2 = inlined_call_operand.vmem [shape: f32[2,4,256], index: 2, kind: input, shape index: {}]   ;;  %s768_s3 = inlined_call_operand.hbm [shape: f32[2,8,256], index: 3, kind: output, shape index: {}]  }
   0x1   :  { %10 = vsyncpa [#allocation3 + $0x1], 0  ;;  %s647_s12 = smov 0   ;;  %s649_s13 = smov 0  }
   0x2   :  { %s651_s14 = smov 0   ;;  %s653_s15 = smov 0  }
   0x3   :  { %s655_s16 = smov 0   ;;  %s657_s17 = smov 0  }
   0x4 LB: > { %s465_s18 = sadd.s32 4294967295, %s622_s17   ;;  %s466_s19 = sadd.s32 4294967294, %s622_s17   ;;  %s622_s17 = sphi %s657_s17, %s16_s17   ;;  %s618_s16 = sphi %s655_s16, %s775_s16   ;;  %s614_s15 = sphi %s653_s15, %s774_s15   ;;  %s610_s14 = sphi %s651_s14, %s773_s14   ;;  %s606_s13 = sphi %s649_s13, %s772_s13   ;;  %s602_s12 = sphi %s647_s12, %s771_s12  }
   0x5   : > { %s35_s20 = sadd.s32 1, %s618_s16  ;;  %s126_s21 = sadd.s32 1, %s610_s14 }
   0x6   : > { %p37_p0 = scmp.ge.s32.totalorder %s35_s20, 2  ;;  %p136_p1 = scmp.ne.s32.totalorder %s610_s14, %s606_s13 }
   0x7   : > { %p137_p2 = scmp.eq.s32.totalorder %s465_s18, 1  ;;  %p142_p3 = scmp.ne.s32.totalorder %s606_s13, %s602_s12 }
   0x8   : > { %s777_s20 = smov (%p37_p0, %s35_s20), 0  ;;  %p143_p5 = scmp.eq.s32.totalorder %s466_s19, 1 }
   0x9   : > { %p687_p4 = por %p137_p2, %p136_p1  ;;  %s119_s23 = ssub.s32 %s618_s16, %s777_s20 }
   0xa   : > { %p471_p6 = scmp.ge.s32.totalorder %s622_s17, 1  ;;  %p124_p7 = scmp.eq.s32.totalorder %s119_s23, 0 }
   0xb   : > { %p694_p8 = por %p143_p5, %p142_p3  ;;  %p188_p9 = scmp.lt.s32.totalorder %s622_s17, 3 }
   0xc   : > { %s700_s25 = scalar_select %p124_p7, %s610_s14, %s126_s21  }
   0xd   : > { %p189_p10 = pnand %p471_p6, %p188_p9 }
   0xe   : > { %p233_p11 = scmp.lt.s32.totalorder (!%p189_p10), %s614_s15, 1  ;;  %v624_v0 = vmov (!%p189_p10), 0.0   ;;  %v625_v1 = vmov (!%p189_p10), 0   ;;  %v245_v2 = vld [vmem:[%s766_s1] sm:$0xff] (!%p189_p10)  ;;  %vm257_vm0 = vcmask (!%p189_p10), 1043456   ;;  %vm253_vm1 = vcmask (!%p189_p10), 31744  }
   0xf   : > { %192 = sbr.rel (%p189_p10) target bundleno = 260 (0x104), region = 32  ;;  %326 = vmatprep.mubr.f32.mxu0 (!%p189_p10), %v624_v0  ;;  %542 = vset.pattern.permute.xlu0 (!%p189_p10), %v625_v1  ;;  %v243_v5 = vld [vmem:[%s765_s0] sm:$0xff] (!%p189_p10)  ;;  %s221_s8 = sand.u32 (!%p189_p10), 1, %s606_s13  }
  0x10   : > { %248 = vperm.xlu0 (!%p189_p10), %542, %v245_v2   ;;  %s472_s9 = sshll.u32 (!%p189_p10), %s221_s8, 4  ;;  %s484_s10 = sshll.u32 (!%p189_p10), %s614_s15, 8 }
  0x11   : > { %s223_s11 = scalar_lea.vmem (!%p189_p10), [#allocation2], %s472_s9  ;;  %s718_s23 = scalar_lea.hbm (!%p189_p10), %s768_s3, %s484_s10 }
  0x12   : > { %s354_s18 = sshll.u32 (!%p189_p10), %s223_s11, 4  ;;  %s336_s26 = scalar_lea.sflag (!%p189_p10), [#allocation3], %s221_s8  ;;  %s720_s18 = int_to_ptr.vmem [resolvable:$true] %s354_s18 }
  0x13   : > { %s626_s27 = smov (!%p189_p10), [#allocation2]  }
  0x16   : > { %s234_s28 = scalar_select %p233_p11, %s614_s15, 1 }
  0x17   : > { %s544_s15 = scalar_lea.vmem %s720_s18, 256 }
  0x18   : > { %s483_s29 = sshll.u32 %s234_s28, 3  ;;  %p545_p12 = scmp.ne.s32.totalorder %s720_s18, %s544_s15 }
  0x19   : > { %s240_s5 = scalar_lea.vmem %s767_s2, %s483_s29  ;;  %s548_s28 = sshll.u32 %s626_s27, 4  ;;  %s549_s28 = int_to_ptr.vmem [resolvable:$false] %s548_s28 }
  0x1a   : > { %v244_v3 = vld [vmem:[%s240_s5] sm:$0xff]  ;;  %p546_p13 = pnand %p545_p12, %p687_p4  ;;  %s550_s29 = scalar_lea.vmem %s549_s28, 512 }
  0x1b   : > { %v252_v4 = vcombine.high %v244_v3, %v244_v3  ;;  %p551_p1 = scmp.lt.s32.totalorder %s720_s18, %s549_s28  ;;  %p552_p2 = scmp.lt.s32.totalorder %s550_s29, %s544_s15 }
  0x1c   : > { %p547_p0 = pneg %p546_p13 }
  0x1d   : > { %475 = vmatprep.subr.msk.mxu0 %vm257_vm0, %v252_v4  ;;  %p553_p3 = por %p552_p2, %p551_p1 }
  0x1e   : > { %476 = vmatpush1.msk.msra.mxu0 %vm257_vm0, %v244_v3 }
  0x1f   : > { %477 = vmatmul.mubr.msk.f32.vlgmr.msra.gmra.mrb[0].mxu0 %vm253_vm1, %v243_v5  ;;  %p554_p5 = pnand %p553_p3, %p547_p0 }
  0x8f   : > { %v249_v6 = vpop.permute.xlu0 %248 }
  0xf2   : > { %v328_v7 = vpop.f32.mrb[0].mxu0 }
  0xf3   : > { %v329_v8 = vadd.f32 %v328_v7, %v249_v6  ;;  %v330_v9 = vpop.f32.mrb[1].mxu0 }
  0xf4   : > { %v331_v10 = vadd.f32 %v330_v9, %v249_v6 }
  0xf5   : > { %333 = vst [vmem:[%s223_s11] sm:$0xff] %v329_v8 }
  0xf6   : > { %334 = vst [vmem:[%s223_s11 + $0x8] sm:$0xff] %v331_v10 }
  0xf7   : > { %557 = shalt.err (!%p554_p5)
}
  0xf8   : > { %s558_s30 = scalar_lea.hbm %s718_s23, 256  ;;  %s562_s6 = scalar_lea.hbm %s768_s3, 512 }
  0xf9   : > { %p559_p6 = scmp.ne.s32.totalorder %s718_s23, %s558_s30  ;;  %p563_p10 = scmp.lt.u32.totalorder %s718_s23, %s768_s3 }
  0xfa   : > { %p564_p11 = scmp.lt.u32.totalorder %s562_s6, %s558_s30  ;;  %p566_p13 = scmp.lt.u32.totalorder %s558_s30, %s718_s23 }
  0xfb   : > { %p560_p7 = pnand %p559_p6, %p687_p4 }
  0xfc   : > { %p565_p12 = por %p564_p11, %p563_p10 }
  0xfd   : > { %p561_p9 = pneg %p560_p7 }
  0xfe   : > { %p567_p0 = por %p566_p13, %p565_p12 }
 0x100   : > { %p568_p1 = pnand %p567_p0, %p561_p9 }
 0x102   : > { %571 = shalt.err (!%p568_p1)
}
 0x103   : > { %485 = dma.vmem_to_hbm [thread:$0]  (%p687_p4), %s720_s18, 256, %s718_s23, %s336_s26  }
 0x104 PF: > { %p491_p2 = scmp.ge.s32.totalorder %s622_s17, 2  ;;  %s366_s9 = sand.u32 1, %s602_s12  }
 0x105   : > { %s367_s10 = scalar_lea.sflag [#allocation3], %s366_s9 }
 0x106   : > { %p488_p3 = pnand %p491_p2, %p694_p8 }
 0x108   : > { %597 = dma.done.wait (!%p488_p3), %s367_s10, 256  }
 0x109   : > { %599 = vsyncadd (!%p488_p3), %s367_s10, 4294967040  ;;  %s16_s17 = sadd.s32 1, %s622_s17   ;;  %s771_s12 = smov %s606_s13 }
 0x10a   : > { %p13_p5 = scmp.ge.s32.totalorder %s16_s17, 4   ;;  %s772_s13 = smov %s610_s14 }
 0x10b   : > { %s773_s14 = smov %s700_s25  ;;  %s774_s15 = smov %s618_s16 }
 0x10c   : > { %s775_s16 = smov %s777_s20  ;;  %15 = sbr.rel (!%p13_p5) target bundleno = 4 (0x4), region = 73 }
 0x113   :  { %372 = vsyncpa [#allocation3], 1 }
 0x114   :  { %374 = vsyncpa [#allocation3 + $0x1], 1 }

// kernel: tpu_custom_call.1
= control target key start
LH: loop header
LB: loop body
LE: loop exit
PB: predicated region body
PF: predicated region fallthrough
CT: control target
= control target key end

     0   :  { %8 = vsyncpa [#allocation3], 0  ;;  %s765_s0 = inlined_call_operand.vmem [shape: f32[8,4], index: 0, kind: input, shape index: {}]   ;;  %s766_s1 = inlined_call_operand.vmem [shape: f32[8,1], index: 1, kind: input, shape index: {}]   ;;  %s767_s2 = inlined_call_operand.vmem [shape: f32[2,4,256], index: 2, kind: input, shape index: {}]   ;;  %s768_s3 = inlined_call_operand.hbm [shape: f32[2,8,256], index: 3, kind: output, shape index: {}]  }
   0x1   :  { %10 = vsyncpa [#allocation3 + $0x1], 0  ;;  %s647_s12 = smov 0   ;;  %s649_s13 = smov 0  }
   0x2   :  { %s651_s14 = smov 0   ;;  %s653_s15 = smov 0  }
   0x3   :  { %s655_s16 = smov 0   ;;  %s657_s17 = smov 0  }
   0x4 LB: > { %s465_s18 = sadd.s32 4294967295, %s622_s17   ;;  %s466_s19 = sadd.s32 4294967294, %s622_s17   ;;  %s622_s17 = sphi %s657_s17, %s16_s17   ;;  %s618_s16 = sphi %s655_s16, %s775_s16   ;;  %s614_s15 = sphi %s653_s15, %s774_s15   ;;  %s610_s14 = sphi %s651_s14, %s773_s14   ;;  %s606_s13 = sphi %s649_s13, %s772_s13   ;;  %s602_s12 = sphi %s647_s12, %s771_s12  }
   0x5   : > { %s35_s20 = sadd.s32 1, %s618_s16  ;;  %s126_s21 = sadd.s32 1, %s610_s14 }
   0x6   : > { %p37_p0 = scmp.ge.s32.totalorder %s35_s20, 2  ;;  %p136_p1 = scmp.ne.s32.totalorder %s610_s14, %s606_s13 }
   0x7   : > { %p137_p2 = scmp.eq.s32.totalorder %s465_s18, 1  ;;  %p142_p3 = scmp.ne.s32.totalorder %s606_s13, %s602_s12 }
   0x8   : > { %s777_s20 = smov (%p37_p0, %s35_s20), 0  ;;  %p143_p5 = scmp.eq.s32.totalorder %s466_s19, 1 }
   0x9   : > { %p687_p4 = por %p137_p2, %p136_p1  ;;  %s119_s23 = ssub.s32 %s618_s16, %s777_s20 }
   0xa   : > { %p471_p6 = scmp.ge.s32.totalorder %s622_s17, 1  ;;  %p124_p7 = scmp.eq.s32.totalorder %s119_s23, 0 }
   0xb   : > { %p694_p8 = por %p143_p5, %p142_p3  ;;  %p188_p9 = scmp.lt.s32.totalorder %s622_s17, 3 }
   0xc   : > { %s700_s25 = scalar_select %p124_p7, %s610_s14, %s126_s21  }
   0xd   : > { %p189_p10 = pnand %p471_p6, %p188_p9 }
   0xe   : > { %p233_p11 = scmp.lt.s32.totalorder (!%p189_p10), %s614_s15, 1  ;;  %v624_v0 = vmov (!%p189_p10), 0.0   ;;  %v625_v1 = vmov (!%p189_p10), 0   ;;  %v245_v2 = vld [vmem:[%s766_s1] sm:$0xff] (!%p189_p10)  ;;  %vm257_vm0 = vcmask (!%p189_p10), 1043456   ;;  %vm253_vm1 = vcmask (!%p189_p10), 31744  }
   0xf   : > { %192 = sbr.rel (%p189_p10) target bundleno = 260 (0x104), region = 32  ;;  %326 = vmatprep.mubr.f32.mxu0 (!%p189_p10), %v624_v0  ;;  %542 = vset.pattern.permute.xlu0 (!%p189_p10), %v625_v1  ;;  %v243_v5 = vld [vmem:[%s765_s0] sm:$0xff] (!%p189_p10)  ;;  %s221_s8 = sand.u32 (!%p189_p10), 1, %s606_s13  }
  0x10   : > { %248 = vperm.xlu0 (!%p189_p10), %542, %v245_v2   ;;  %s472_s9 = sshll.u32 (!%p189_p10), %s221_s8, 4  ;;  %s484_s10 = sshll.u32 (!%p189_p10), %s614_s15, 8 }
  0x11   : > { %s223_s11 = scalar_lea.vmem (!%p189_p10), [#allocation2], %s472_s9  ;;  %s718_s23 = scalar_lea.hbm (!%p189_p10), %s768_s3, %s484_s10 }
  0x12   : > { %s354_s18 = sshll.u32 (!%p189_p10), %s223_s11, 4  ;;  %s336_s26 = scalar_lea.sflag (!%p189_p10), [#allocation3], %s221_s8  ;;  %s720_s18 = int_to_ptr.vmem [resolvable:$true] %s354_s18 }
  0x13   : > { %s626_s27 = smov (!%p189_p10), [#allocation2]  }
  0x16   : > { %s234_s28 = scalar_select %p233_p11, %s614_s15, 1 }
  0x17   : > { %s544_s15 = scalar_lea.vmem %s720_s18, 256 }
  0x18   : > { %s483_s29 = sshll.u32 %s234_s28, 3  ;;  %p545_p12 = scmp.ne.s32.totalorder %s720_s18, %s544_s15 }
  0x19   : > { %s240_s5 = scalar_lea.vmem %s767_s2, %s483_s29  ;;  %s548_s28 = sshll.u32 %s626_s27, 4  ;;  %s549_s28 = int_to_ptr.vmem [resolvable:$false] %s548_s28 }
  0x1a   : > { %v244_v3 = vld [vmem:[%s240_s5] sm:$0xff]  ;;  %p546_p13 = pnand %p545_p12, %p687_p4  ;;  %s550_s29 = scalar_lea.vmem %s549_s28, 512 }
  0x1b   : > { %v252_v4 = vcombine.high %v244_v3, %v244_v3  ;;  %p551_p1 = scmp.lt.s32.totalorder %s720_s18, %s549_s28  ;;  %p552_p2 = scmp.lt.s32.totalorder %s550_s29, %s544_s15 }
  0x1c   : > { %p547_p0 = pneg %p546_p13 }
  0x1d   : > { %475 = vmatprep.subr.msk.mxu0 %vm257_vm0, %v252_v4  ;;  %p553_p3 = por %p552_p2, %p551_p1 }
  0x1e   : > { %476 = vmatpush1.msk.msra.mxu0 %vm257_vm0, %v244_v3 }
  0x1f   : > { %477 = vmatmul.mubr.msk.f32.vlgmr.msra.gmra.mrb[0].mxu0 %vm253_vm1, %v243_v5  ;;  %p554_p5 = pnand %p553_p3, %p547_p0 }
  0x8f   : > { %v249_v6 = vpop.permute.xlu0 %248 }
  0xf2   : > { %v328_v7 = vpop.f32.mrb[0].mxu0 }
  0xf3   : > { %v329_v8 = vadd.f32 %v328_v7, %v249_v6  ;;  %v330_v9 = vpop.f32.mrb[1].mxu0 }
  0xf4   : > { %v331_v10 = vadd.f32 %v330_v9, %v249_v6 }
  0xf5   : > { %333 = vst [vmem:[%s223_s11] sm:$0xff] %v329_v8 }
  0xf6   : > { %334 = vst [vmem:[%s223_s11 + $0x8] sm:$0xff] %v331_v10 }
  0xf7   : > { %557 = shalt.err (!%p554_p5)
}
  0xf8   : > { %s558_s30 = scalar_lea.hbm %s718_s23, 256  ;;  %s562_s6 = scalar_lea.hbm %s768_s3, 512 }
  0xf9   : > { %p559_p6 = scmp.ne.s32.totalorder %s718_s23, %s558_s30  ;;  %p563_p10 = scmp.lt.u32.totalorder %s718_s23, %s768_s3 }
  0xfa   : > { %p564_p11 = scmp.lt.u32.totalorder %s562_s6, %s558_s30  ;;  %p566_p13 = scmp.lt.u32.totalorder %s558_s30, %s718_s23 }
  0xfb   : > { %p560_p7 = pnand %p559_p6, %p687_p4 }
  0xfc   : > { %p565_p12 = por %p564_p11, %p563_p10 }
  0xfd   : > { %p561_p9 = pneg %p560_p7 }
  0xfe   : > { %p567_p0 = por %p566_p13, %p565_p12 }
 0x100   : > { %p568_p1 = pnand %p567_p0, %p561_p9 }
 0x102   : > { %571 = shalt.err (!%p568_p1)
}
 0x103   : > { %485 = dma.vmem_to_hbm [thread:$0]  (%p687_p4), %s720_s18, 256, %s718_s23, %s336_s26  }
 0x104 PF: > { %p491_p2 = scmp.ge.s32.totalorder %s622_s17, 2  ;;  %s366_s9 = sand.u32 1, %s602_s12  }
 0x105   : > { %s367_s10 = scalar_lea.sflag [#allocation3], %s366_s9 }
 0x106   : > { %p488_p3 = pnand %p491_p2, %p694_p8 }
 0x108   : > { %597 = dma.done.wait (!%p488_p3), %s367_s10, 256  }
 0x109   : > { %599 = vsyncadd (!%p488_p3), %s367_s10, 4294967040  ;;  %s16_s17 = sadd.s32 1, %s622_s17   ;;  %s771_s12 = smov %s606_s13 }
 0x10a   : > { %p13_p5 = scmp.ge.s32.totalorder %s16_s17, 4   ;;  %s772_s13 = smov %s610_s14 }
 0x10b   : > { %s773_s14 = smov %s700_s25  ;;  %s774_s15 = smov %s618_s16 }
 0x10c   : > { %s775_s16 = smov %s777_s20  ;;  %15 = sbr.rel (!%p13_p5) target bundleno = 4 (0x4), region = 73 }
 0x113   :  { %372 = vsyncpa [#allocation3], 1 }
 0x114   :  { %374 = vsyncpa [#allocation3 + $0x1], 1 }

</bundles_post_ra>
